<compile_context>
chip_gen: v5e
topology: v5e:2x2
jax: 0.10.0
libtpu: 0.0.40
codegen_flags: <defaults>
</compile_context>

<pallas_src>
import functools

import jax
import jax.numpy as jnp
from jax import lax
from jax.experimental import pallas as pl
from jax.experimental.pallas import tpu as pltpu

_LANES = 128
_MAX_UNROLL_C = 32        # fully unroll class loop up to this many classes
_PAD_LOSS = -1.0          # sentinel for padded pixels (real CE loss is >= 0)


def _round_up(x, m):
    return ((x + m - 1) // m) * m


def _cdiv(a, b):
    return -(-a // b)


def _make_ce_kernel(C, tile_rows, strip_rows, L, threshold, n_valid, needs_mask):
    """Build the per-tile CE kernel.

    Ref shapes inside the kernel:
      logits_ref: (C, tile_rows, L)  float (compute in f32), class axis leading
      target_ref: (tile_rows, L)     int32
      loss_ref:   (tile_rows, L)     f32 per-pixel CE (sentinel on padding)
      cnt_ref:    (8, L)             int32 per-tile count(loss > threshold)
      sum_ref:    (8, L)             f32   per-tile sum(loss where > threshold)
    """
    n_strips = tile_rows // strip_rows
    groups = strip_rows // 8

    def kernel(logits_ref, target_ref, loss_ref, cnt_ref, sum_ref):
        tile_row0 = pl.program_id(1) * tile_rows

        if needs_mask:
            # Loop-invariant flat-index base, hoisted out of the strip loop.
            row_iota = lax.broadcasted_iota(jnp.int32, (strip_rows, L), 0)
            lane_iota = lax.broadcasted_iota(jnp.int32, (strip_rows, L), 1)
            base_flat = row_iota * L + lane_iota
        else:
            base_flat = None

        def strip_body(i, carry):
            cnt_acc, sum_acc = carry
            r0 = pl.multiple_of(i * strip_rows, strip_rows)
            tgt = target_ref[pl.ds(r0, strip_rows), :]

            # ---- pass 1: running max over classes + target-class pick (VPU only)
            x0 = logits_ref[0, pl.ds(r0, strip_rows), :].astype(jnp.float32)
            m = x0
            picked = jnp.where(tgt == 0, x0, 0.0)
            if C <= _MAX_UNROLL_C:
                for c in range(1, C):
                    x = logits_ref[c, pl.ds(r0, strip_rows), :].astype(jnp.float32)
                    m = jnp.maximum(m, x)
                    picked = jnp.where(tgt == c, x, picked)
            else:
                def pass1(c, mp):
                    mm, pp = mp
                    x = logits_ref[c, pl.ds(r0, strip_rows), :].astype(jnp.float32)
                    return jnp.maximum(mm, x), jnp.where(tgt == c, x, pp)
                m, picked = lax.fori_loop(1, C, pass1, (m, picked), unroll=4)

            # ---- pass 2: sum of exp (EUP); only m and s live across classes
            if C <= _MAX_UNROLL_C:
                s = jnp.zeros_like(m)
                for c in range(C):
                    x = logits_ref[c, pl.ds(r0, strip_rows), :].astype(jnp.float32)
                    s = s + jnp.exp(x - m)
            else:
                def pass2(c, acc):
                    x = logits_ref[c, pl.ds(r0, strip_rows), :].astype(jnp.float32)
                    return acc + jnp.exp(x - m)
                s = lax.fori_loop(0, C, pass2, jnp.zeros_like(m), unroll=4)

            loss = (m - picked) + jnp.log(s)

            if needs_mask:
                valid = (base_flat + (tile_row0 + r0) * L) < n_valid
                loss = jnp.where(valid, loss, _PAD_LOSS)
                sel = valid & (loss > threshold)
            else:
                sel = loss > threshold

            loss_ref[pl.ds(r0, strip_rows), :] = loss

            # OHEM partial reductions ride in spare VPU slots of an HBM-bound kernel.
            cnt_s = sel.astype(jnp.int32)
            sum_s = jnp.where(sel, loss, 0.0)
            for g in range(groups):
                cnt_acc = cnt_acc + cnt_s[g * 8:(g + 1) * 8, :]
                sum_acc = sum_acc + sum_s[g * 8:(g + 1) * 8, :]
            return cnt_acc, sum_acc

        cnt0 = jnp.zeros((8, L), jnp.int32)
        sum0 = jnp.zeros((8, L), jnp.float32)
        cnt, ssum = lax.fori_loop(0, n_strips, strip_body, (cnt0, sum0))
        cnt_ref[...] = cnt
        sum_ref[...] = ssum

    return kernel


def _choose_rows(R_pad, C, L, itemsize, budget_bytes, N):
    rows = budget_bytes // (C * L * itemsize)
    rows = max(8, (rows // 8) * 8)
    tr = min(R_pad, rows)
    # Keep >= 2 parallel grid steps so both v7x TensorCores get work.
    if N * _cdiv(R_pad, tr) < 2 and R_pad > 8:
        tr = max(8, ((R_pad // 2) // 8) * 8)
    return tr


def cross_entropy_per_pixel_with_stats(logits_nchw, target_nhw, threshold,
                                       vmem_block_budget=8 << 20):
    """Per-pixel CE over NCHW logits (no wrapper transpose) + OHEM partials.

    Returns:
      loss:  (N, R_pad, 128) f32 — per-pixel CE, padded pixels hold -1.0
      count: ()  int32 — number of pixels with loss > threshold
      lsum:  ()  f32   — sum of losses > threshold
    """
    N, C, H, W = logits_nchw.shape
    S = H * W
    L = _LANES
    R = _cdiv(S, L)
    R_pad = _round_up(max(R, 8), 8)          # lane-dense, sublane-aligned spatial
    S_pad = R_pad * L

    itemsize = jnp.dtype(logits_nchw.dtype).itemsize
    tr = _choose_rows(R_pad, C, L, itemsize, vmem_block_budget, N)
    grid_r = _cdiv(R_pad, tr)
    sr = 32 if tr % 32 == 0 else (16 if tr % 16 == 0 else 8)
    needs_mask = (S != S_pad) or (R_pad % tr != 0)

    logits = logits_nchw.reshape(N, C, S)
    target = target_nhw.reshape(N, S).astype(jnp.int32)
    if S_pad != S:
        logits = jnp.pad(logits, ((0, 0), (0, 0), (0, S_pad - S)))
        target = jnp.pad(target, ((0, 0), (0, S_pad - S)), constant_values=-1)
    logits = logits.reshape(N, C, R_pad, L)
    target = target.reshape(N, R_pad, L)

    kernel = _make_ce_kernel(C, tr, sr, L, float(threshold), S, needs_mask)

    loss, cnt_part, sum_part = pl.pallas_call(
        kernel,
        out_shape=(
            jax.ShapeDtypeStruct((N, R_pad, L), jnp.float32),
            jax.ShapeDtypeStruct((N * grid_r, 8, L), jnp.int32),
            jax.ShapeDtypeStruct((N * grid_r, 8, L), jnp.float32),
        ),
        grid_spec=pltpu.PrefetchScalarGridSpec(
            num_scalar_prefetch=0,
            grid=(N, grid_r),
            in_specs=[
                # batch squeezed; class axis leading; spatial on sublane/lane
                pl.BlockSpec((None, C, tr, L), lambda n, r: (n, 0, r, 0)),
                pl.BlockSpec((None, tr, L), lambda n, r: (n, r, 0)),
            ],
            out_specs=[
                pl.BlockSpec((None, tr, L), lambda n, r: (n, r, 0)),
                pl.BlockSpec((None, 8, L), lambda n, r: (n * grid_r + r, 0, 0)),
                pl.BlockSpec((None, 8, L), lambda n, r: (n * grid_r + r, 0, 0)),
            ],
        ),
        compiler_params=pltpu.CompilerParams(
            dimension_semantics=("parallel", "parallel"),
            vmem_limit_bytes=48 << 20),
    )(logits, target)

    return loss, jnp.sum(cnt_part), jnp.sum(sum_part)


def ohem_cross_entropy_loss(output, target, threshold, keep_num):
    """Matches OHEM_CrossEntroy_Loss.forward (threshold / keep_num are static).

    output: (N, C, H, W) float logits (NCHW, like PyTorch)
    target: (N, H, W)    int class indices in [0, C)
    """
    # TODO(synk): no ignore_index handling (reference uses plain nn.CrossEntropyLoss).
    N, C, H, W = output.shape
    M = N * H * W
    assert keep_num < M, "keep_num must be < number of pixels"

    loss_img, count, over_sum = cross_entropy_per_pixel_with_stats(
        output, target, threshold)

    # "(keep_num+1)-th largest loss > threshold"  <=>  "count(loss > threshold) > keep_num",
    # so top_k only runs in the (rare) "not enough hard pixels" branch.
    def over_threshold(_):
        # Safe division: this branch only runs when count >= keep_num + 1 >= 1.
        return over_sum / count.astype(jnp.float32)

    def top_k_branch(_):
        # Padded pixels carry sentinel -1.0 < 0 <= any CE loss and keep_num < M,
        # so the top-k values are always real pixels.
        top_vals = lax.top_k(loss_img.reshape(-1), keep_num)[0]
        return jnp.mean(top_vals)

    return lax.cond(count > keep_num, over_threshold, top_k_branch, None)


if __name__ == "__main__":
    key = jax.random.PRNGKey(0)
    k_logits, k_target = jax.random.split(key)

    N, C, H, W = 2, 4, 16, 16            # M = N*H*W = 512
    threshold = 0.7
    keep_num = 100                        # must be < M

    output = jax.random.normal(k_logits, (N, C, H, W), dtype=jnp.float32)
    target = jax.random.randint(k_target, (N, H, W), 0, C, dtype=jnp.int32)

    ohem = jax.jit(functools.partial(
        ohem_cross_entropy_loss, threshold=threshold, keep_num=keep_num))
    loss = ohem(output, target)
    jax.block_until_ready(loss)

    # silent pure-JAX reference check (mirrors the PyTorch forward exactly)
    ref_logits = jnp.transpose(output, (0, 2, 3, 1)).reshape(-1, C)
    ref_tgt = target.reshape(-1)
    ref_ls = jax.nn.log_softmax(ref_logits, axis=-1)
    ref_loss = -jnp.take_along_axis(ref_ls, ref_tgt[:, None], axis=1)[:, 0]
    ref_sorted = jnp.sort(ref_loss)[::-1]
    t_in = ref_sorted[keep_num]
    mask = ref_loss > threshold
    ref_over = (jnp.sum(jnp.where(mask, ref_loss, 0.0)) /
                jnp.maximum(jnp.sum(mask.astype(jnp.float32)), 1.0))
    ref_topk = jnp.mean(ref_sorted[:keep_num])
    ref_final = jnp.where(t_in > threshold, ref_over, ref_topk)
    assert jnp.allclose(loss, ref_final, atol=1e-5, rtol=1e-5), (loss, ref_final)

    print("KERNEL_OK")
</pallas_src>

<mosaic_0001>
module attributes {stable_mosaic.version = 11 : i64} {
  func.func @kernel(%arg0: i32, %arg1: i32, %arg2: memref<1x4x8x128xf32, #tpu.memory_space<vmem>>, %arg3: memref<1x8x128xi32, #tpu.memory_space<vmem>>, %arg4: memref<1x8x128xf32, #tpu.memory_space<vmem>>, %arg5: memref<1x8x128xi32, #tpu.memory_space<vmem>>, %arg6: memref<1x8x128xf32, #tpu.memory_space<vmem>>) attributes {dimension_semantics = [#tpu.dimension_semantics<parallel>, #tpu.dimension_semantics<parallel>], iteration_bounds = array<i64: 2, 1>, scalar_prefetch = 0 : i64, scratch_operands = 0 : i64, tpu.core_type = #tpu.core_type<tc>, window_params = [{transform_indices = @transform_0, window_bounds = array<i64: 1, 4, 8, 128>}, {transform_indices = @transform_1, window_bounds = array<i64: 1, 8, 128>}, {transform_indices = @transform_2, window_bounds = array<i64: 1, 8, 128>}, {transform_indices = @transform_3, window_bounds = array<i64: 1, 8, 128>}, {transform_indices = @transform_4, window_bounds = array<i64: 1, 8, 128>}]} {
    %c8_i32 = arith.constant 8 : i32
    %0 = arith.muli %arg1, %c8_i32 : i32
    %1 = tpu.iota {dimensions = array<i32: 0>} : vector<8x128xi32>
    %2 = tpu.iota {dimensions = array<i32: 1>} : vector<8x128xi32>
    %c128_i32 = arith.constant 128 : i32
    %3 = vector.broadcast %c128_i32 : i32 to vector<8x128xi32>
    %4 = arith.muli %1, %3 : vector<8x128xi32>
    %5 = arith.addi %4, %2 : vector<8x128xi32>
    %c0_i32 = arith.constant 0 : i32
    %6 = vector.broadcast %c0_i32 : i32 to vector<8x128xi32>
    %cst = arith.constant 0.000000e+00 : f32
    %7 = vector.broadcast %cst : f32 to vector<8x128xf32>
    %c0_i32_0 = arith.constant 0 : i32
    %c8_i32_1 = arith.constant 8 : i32
    %8 = arith.muli %c0_i32_0, %c8_i32_1 : i32
    %9 = tpu.assume_multiple %8, 8 : i32
    %c0 = arith.constant 0 : index
    %10 = arith.index_cast %9 : i32 to index
    %c0_2 = arith.constant 0 : index
    %11 = vector.load %arg3[%c0, %10, %c0_2] : memref<1x8x128xi32, #tpu.memory_space<vmem>>, vector<1x8x128xi32>
    %12 = vector.shape_cast %11 : vector<1x8x128xi32> to vector<8x128xi32>
    %c0_3 = arith.constant 0 : index
    %c0_4 = arith.constant 0 : index
    %13 = arith.index_cast %9 : i32 to index
    %c0_5 = arith.constant 0 : index
    %14 = vector.load %arg2[%c0_3, %c0_4, %13, %c0_5] : memref<1x4x8x128xf32, #tpu.memory_space<vmem>>, vector<1x1x8x128xf32>
    %15 = vector.shape_cast %14 : vector<1x1x8x128xf32> to vector<8x128xf32>
    %c0_i32_6 = arith.constant 0 : i32
    %16 = vector.broadcast %c0_i32_6 : i32 to vector<8x128xi32>
    %17 = arith.cmpi eq, %12, %16 : vector<8x128xi32>
    %cst_7 = arith.constant 0.000000e+00 : f32
    %18 = vector.broadcast %cst_7 : f32 to vector<8x128xf32>
    %19 = arith.select %17, %15, %18 : vector<8x128xi1>, vector<8x128xf32>
    %c0_8 = arith.constant 0 : index
    %c1 = arith.constant 1 : index
    %20 = arith.index_cast %9 : i32 to index
    %c0_9 = arith.constant 0 : index
    %21 = vector.load %arg2[%c0_8, %c1, %20, %c0_9] : memref<1x4x8x128xf32, #tpu.memory_space<vmem>>, vector<1x1x8x128xf32>
    %22 = vector.shape_cast %21 : vector<1x1x8x128xf32> to vector<8x128xf32>
    %23 = arith.maximumf %15, %22 : vector<8x128xf32>
    %c1_i32 = arith.constant 1 : i32
    %24 = vector.broadcast %c1_i32 : i32 to vector<8x128xi32>
    %25 = arith.cmpi eq, %12, %24 : vector<8x128xi32>
    %26 = arith.select %25, %22, %19 : vector<8x128xi1>, vector<8x128xf32>
    %c0_10 = arith.constant 0 : index
    %c2 = arith.constant 2 : index
    %27 = arith.index_cast %9 : i32 to index
    %c0_11 = arith.constant 0 : index
    %28 = vector.load %arg2[%c0_10, %c2, %27, %c0_11] : memref<1x4x8x128xf32, #tpu.memory_space<vmem>>, vector<1x1x8x128xf32>
    %29 = vector.shape_cast %28 : vector<1x1x8x128xf32> to vector<8x128xf32>
    %30 = arith.maximumf %23, %29 : vector<8x128xf32>
    %c2_i32 = arith.constant 2 : i32
    %31 = vector.broadcast %c2_i32 : i32 to vector<8x128xi32>
    %32 = arith.cmpi eq, %12, %31 : vector<8x128xi32>
    %33 = arith.select %32, %29, %26 : vector<8x128xi1>, vector<8x128xf32>
    %c0_12 = arith.constant 0 : index
    %c3 = arith.constant 3 : index
    %34 = arith.index_cast %9 : i32 to index
    %c0_13 = arith.constant 0 : index
    %35 = vector.load %arg2[%c0_12, %c3, %34, %c0_13] : memref<1x4x8x128xf32, #tpu.memory_space<vmem>>, vector<1x1x8x128xf32>
    %36 = vector.shape_cast %35 : vector<1x1x8x128xf32> to vector<8x128xf32>
    %37 = arith.maximumf %30, %36 : vector<8x128xf32>
    %c3_i32 = arith.constant 3 : i32
    %38 = vector.broadcast %c3_i32 : i32 to vector<8x128xi32>
    %39 = arith.cmpi eq, %12, %38 : vector<8x128xi32>
    %40 = arith.select %39, %36, %33 : vector<8x128xi1>, vector<8x128xf32>
    %cst_14 = arith.constant 0.000000e+00 : f32
    %41 = vector.broadcast %cst_14 : f32 to vector<8x128xf32>
    %c0_15 = arith.constant 0 : index
    %c0_16 = arith.constant 0 : index
    %42 = arith.index_cast %9 : i32 to index
    %c0_17 = arith.constant 0 : index
    %43 = vector.load %arg2[%c0_15, %c0_16, %42, %c0_17] : memref<1x4x8x128xf32, #tpu.memory_space<vmem>>, vector<1x1x8x128xf32>
    %44 = vector.shape_cast %43 : vector<1x1x8x128xf32> to vector<8x128xf32>
    %45 = arith.subf %44, %37 : vector<8x128xf32>
    %46 = math.exp %45 : vector<8x128xf32>
    %47 = arith.addf %41, %46 : vector<8x128xf32>
    %c0_18 = arith.constant 0 : index
    %c1_19 = arith.constant 1 : index
    %48 = arith.index_cast %9 : i32 to index
    %c0_20 = arith.constant 0 : index
    %49 = vector.load %arg2[%c0_18, %c1_19, %48, %c0_20] : memref<1x4x8x128xf32, #tpu.memory_space<vmem>>, vector<1x1x8x128xf32>
    %50 = vector.shape_cast %49 : vector<1x1x8x128xf32> to vector<8x128xf32>
    %51 = arith.subf %50, %37 : vector<8x128xf32>
    %52 = math.exp %51 : vector<8x128xf32>
    %53 = arith.addf %47, %52 : vector<8x128xf32>
    %c0_21 = arith.constant 0 : index
    %c2_22 = arith.constant 2 : index
    %54 = arith.index_cast %9 : i32 to index
    %c0_23 = arith.constant 0 : index
    %55 = vector.load %arg2[%c0_21, %c2_22, %54, %c0_23] : memref<1x4x8x128xf32, #tpu.memory_space<vmem>>, vector<1x1x8x128xf32>
    %56 = vector.shape_cast %55 : vector<1x1x8x128xf32> to vector<8x128xf32>
    %57 = arith.subf %56, %37 : vector<8x128xf32>
    %58 = math.exp %57 : vector<8x128xf32>
    %59 = arith.addf %53, %58 : vector<8x128xf32>
    %c0_24 = arith.constant 0 : index
    %c3_25 = arith.constant 3 : index
    %60 = arith.index_cast %9 : i32 to index
    %c0_26 = arith.constant 0 : index
    %61 = vector.load %arg2[%c0_24, %c3_25, %60, %c0_26] : memref<1x4x8x128xf32, #tpu.memory_space<vmem>>, vector<1x1x8x128xf32>
    %62 = vector.shape_cast %61 : vector<1x1x8x128xf32> to vector<8x128xf32>
    %63 = arith.subf %62, %37 : vector<8x128xf32>
    %64 = math.exp %63 : vector<8x128xf32>
    %65 = arith.addf %59, %64 : vector<8x128xf32>
    %66 = arith.subf %37, %40 : vector<8x128xf32>
    %67 = math.log %65 : vector<8x128xf32>
    %68 = arith.addf %66, %67 : vector<8x128xf32>
    %69 = arith.addi %0, %9 : i32
    %c128_i32_27 = arith.constant 128 : i32
    %70 = arith.muli %69, %c128_i32_27 : i32
    %71 = vector.broadcast %70 : i32 to vector<8x128xi32>
    %72 = arith.addi %5, %71 : vector<8x128xi32>
    %c256_i32 = arith.constant 256 : i32
    %73 = vector.broadcast %c256_i32 : i32 to vector<8x128xi32>
    %74 = arith.cmpi slt, %72, %73 : vector<8x128xi32>
    %cst_28 = arith.constant -1.000000e+00 : f32
    %75 = vector.broadcast %cst_28 : f32 to vector<8x128xf32>
    %76 = arith.select %74, %68, %75 : vector<8x128xi1>, vector<8x128xf32>
    %cst_29 = arith.constant 0.699999988 : f32
    %77 = vector.broadcast %cst_29 : f32 to vector<8x128xf32>
    %78 = arith.cmpf ogt, %76, %77 : vector<8x128xf32>
    %79 = arith.andi %74, %78 : vector<8x128xi1>
    %c0_30 = arith.constant 0 : index
    %80 = arith.index_cast %9 : i32 to index
    %c0_31 = arith.constant 0 : index
    %81 = vector.load %arg4[%c0_30, %80, %c0_31] : memref<1x8x128xf32, #tpu.memory_space<vmem>>, vector<1x8x128xf32>
    %82 = vector.shape_cast %81 : vector<1x8x128xf32> to vector<8x128xf32>
    %83 = vector.shape_cast %76 : vector<8x128xf32> to vector<1x8x128xf32>
    tpu.vector_store %arg4[%c0_30, %80, %c0_31], %83 {strides = array<i32>} : memref<1x8x128xf32, #tpu.memory_space<vmem>>, vector<1x8x128xf32>,
    %84 = arith.extui %79 : vector<8x128xi1> to vector<8x128xi32>
    %cst_32 = arith.constant 0.000000e+00 : f32
    %85 = vector.broadcast %cst_32 : f32 to vector<8x128xf32>
    %86 = arith.select %79, %76, %85 : vector<8x128xi1>, vector<8x128xf32>
    %87 = arith.addi %6, %84 : vector<8x128xi32>
    %88 = arith.addf %7, %86 : vector<8x128xf32>
    %c1_i32_33 = arith.constant 1 : i32
    %c0_34 = arith.constant 0 : index
    %c0_35 = arith.constant 0 : index
    %c0_36 = arith.constant 0 : index
    %89 = vector.load %arg5[%c0_34, %c0_35, %c0_36] : memref<1x8x128xi32, #tpu.memory_space<vmem>>, vector<1x8x128xi32>
    %90 = vector.shape_cast %89 : vector<1x8x128xi32> to vector<8x128xi32>
    %91 = vector.shape_cast %87 : vector<8x128xi32> to vector<1x8x128xi32>
    tpu.vector_store %arg5[%c0_34, %c0_35, %c0_36], %91 {strides = array<i32>} : memref<1x8x128xi32, #tpu.memory_space<vmem>>, vector<1x8x128xi32>,
    %c0_37 = arith.constant 0 : index
    %c0_38 = arith.constant 0 : index
    %c0_39 = arith.constant 0 : index
    %92 = vector.load %arg6[%c0_37, %c0_38, %c0_39] : memref<1x8x128xf32, #tpu.memory_space<vmem>>, vector<1x8x128xf32>
    %93 = vector.shape_cast %92 : vector<1x8x128xf32> to vector<8x128xf32>
    %94 = vector.shape_cast %88 : vector<8x128xf32> to vector<1x8x128xf32>
    tpu.vector_store %arg6[%c0_37, %c0_38, %c0_39], %94 {strides = array<i32>} : memref<1x8x128xf32, #tpu.memory_space<vmem>>, vector<1x8x128xf32>,
    return
  }
  func.func @transform_0(%arg0: i32, %arg1: i32) -> (i32, i32, i32, i32) {
    %c0_i32 = arith.constant 0 : i32
    %c0_i32_0 = arith.constant 0 : i32
    %c0_i32_1 = arith.constant 0 : i32
    return %arg0, %c0_i32, %arg1, %c0_i32_0 : i32, i32, i32, i32
  }
  func.func @transform_1(%arg0: i32, %arg1: i32) -> (i32, i32, i32) {
    %c0_i32 = arith.constant 0 : i32
    %c0_i32_0 = arith.constant 0 : i32
    return %arg0, %arg1, %c0_i32 : i32, i32, i32
  }
  func.func @transform_2(%arg0: i32, %arg1: i32) -> (i32, i32, i32) {
    %c0_i32 = arith.constant 0 : i32
    %c0_i32_0 = arith.constant 0 : i32
    return %arg0, %arg1, %c0_i32 : i32, i32, i32
  }
  func.func @transform_3(%arg0: i32, %arg1: i32) -> (i32, i32, i32) {
    %c1_i32 = arith.constant 1 : i32
    %0 = arith.muli %arg0, %c1_i32 : i32
    %1 = arith.addi %0, %arg1 : i32
    %c0_i32 = arith.constant 0 : i32
    %c0_i32_0 = arith.constant 0 : i32
    %c0_i32_1 = arith.constant 0 : i32
    return %1, %c0_i32, %c0_i32_0 : i32, i32, i32
  }
  func.func @transform_4(%arg0: i32, %arg1: i32) -> (i32, i32, i32) {
    %c1_i32 = arith.constant 1 : i32
    %0 = arith.muli %arg0, %c1_i32 : i32
    %1 = arith.addi %0, %arg1 : i32
    %c0_i32 = arith.constant 0 : i32
    %c0_i32_0 = arith.constant 0 : i32
    %c0_i32_1 = arith.constant 0 : i32
    return %1, %c0_i32, %c0_i32_0 : i32, i32, i32
  }
}

</mosaic_0001>

<bundles_post_ra>
// kernel: ohem_cross_entropy_loss.1
= control target key start
LH: loop header
LB: loop body
LE: loop exit
PB: predicated region body
PF: predicated region fallthrough
CT: control target
= control target key end

     0   :  { %s615_s15 = smov 0   ;;  %s617_s16 = smov 0   ;;  %s663_s0 = inlined_call_operand.vmem [shape: f32[2,4,8,128], index: 0, kind: input, shape index: {}]   ;;  %s664_s1 = inlined_call_operand.vmem [shape: s32[2,8,128], index: 1, kind: input, shape index: {}]   ;;  %s665_s2 = inlined_call_operand.vmem [shape: f32[2,8,128], index: 2, kind: output, shape index: {0}]   ;;  %s666_s3 = inlined_call_operand.vmem [shape: s32[2,8,128], index: 3, kind: output, shape index: {1}]   ;;  %s667_s4 = inlined_call_operand.vmem [shape: f32[2,8,128], index: 4, kind: output, shape index: {2}]  }
   0x1   :  { %s619_s17 = smov 0  }
   0x2 LB: > { %s27_s18 = sadd.s32 1, %s583_s16  ;;  %p517_p0 = scmp.ge.s32.totalorder %s587_s17, 1  ;;  %s587_s17 = sphi %s619_s17, %s15_s17   ;;  %s583_s16 = sphi %s617_s16, %s669_s16   ;;  %s579_s15 = sphi %s615_s15, %s668_s15  }
   0x3   : > { %p29_p1 = scmp.ge.s32.totalorder %s27_s18, 2  ;;  %p204_p2 = scmp.lt.s32.totalorder %s587_s17, 3 }
   0x5   : > { %s671_s18 = smov (%p29_p1, %s27_s18), 0  ;;  %p205_p3 = pnand %p517_p0, %p204_p2 }
   0x6   : > { %p252_p4 = scmp.lt.s32.totalorder (!%p205_p3), %s579_s15, 1 }
   0x7   : > { %208 = sbr.rel (%p205_p3) target bundleno = 57 (0x39), region = 28 }
   0xc   : > { %s673_s15 = smov (!%p252_p4, %s579_s15), 1  ;;  %v287_v17 = vlaneseq  ;;  %v589_v37 = vmov 0  }
   0xd   : > { %s529_s19 = sshll.u32 %s673_s15, 5  ;;  %s636_s23 = sshll.u32 %s673_s15, 3 }
   0xe   : > { %s259_s22 = scalar_lea.vmem %s663_s0, %s529_s19  ;;  %s266_s26 = scalar_lea.vmem %s664_s1, %s636_s23  ;;  %v288_v23 = vshrl.u32 %v287_v17, 7  ;;  %v290_v28 = vand.u32 127, %v287_v17 }
   0xf   : > { %v294_v0 = vld [vmem:[%s259_s22] sm:$0xff]  ;;  %v524_v1 = vld [vmem:[%s259_s22 + $0x8] sm:$0xff]  ;;  %v525_v3 = vld [vmem:[%s259_s22 + $0x10] sm:$0xff]  ;;  %s273_s29 = scalar_lea.vmem %s665_s2, %s636_s23  ;;  %s278_s6 = scalar_lea.vmem %s666_s3, %s636_s23 }
  0x10   : > { %v300_v2 = vmax.f32 %v294_v0, %v524_v1  ;;  %v526_v4 = vld [vmem:[%s259_s22 + $0x18] sm:$0xff]  ;;  %v293_v15 = vld [vmem:[%s266_s26] sm:$0xff]  ;;  %v291_v29 = vmul.u32 128, %v288_v23  ;;  %s284_s9 = scalar_lea.vmem %s667_s4, %s636_s23 }
  0x11   : > { %vm295_vm0 = vcmp.eq.s32.totalorder %v293_v15, 0  ;;  %vm301_vm1 = vcmp.eq.s32.totalorder %v293_v15, 1  ;;  %vm307_vm2 = vcmp.eq.s32.totalorder %v293_v15, 2  ;;  %vm313_vm3 = vcmp.eq.s32.totalorder %v293_v15, 3 }
  0x12   : > { %v306_v5 = vmax.f32 %v300_v2, %v525_v3  ;;  %v296_v19 = vsel %vm295_vm0, %v294_v0, 0.0  ;;  %v292_v31 = vadd.s32 %v291_v29, %v290_v28 }
  0x13   : > { %v302_v24 = vsel %vm301_vm1, %v524_v1, %v296_v19 }
  0x14   : > { %v312_v6 = vmax.f32 %v306_v5, %v526_v4  ;;  %v308_v27 = vsel %vm307_vm2, %v525_v3, %v302_v24  ;;  %vm339_vm4 = vcmp.lt.s32.totalorder %v292_v31, 256 }
  0x15   : > { %v314_v30 = vsel %vm313_vm3, %v526_v4, %v308_v27 }
  0x16   : > { %v315_v7 = vsub.f32 %v294_v0, %v312_v6  ;;  %v319_v8 = vsub.f32 %v524_v1, %v312_v6  ;;  %v323_v9 = vsub.f32 %v525_v3, %v312_v6  ;;  %v327_v10 = vsub.f32 %v526_v4, %v312_v6 }
  0x17   : > { %v331_v32 = vsub.f32 %v312_v6, %v314_v30 }
  0x18   : > { %v316_v11 = vmul.f32 1.442695, %v315_v7  ;;  %v320_v12 = vmul.f32 1.442695, %v319_v8  ;;  %v324_v13 = vmul.f32 1.442695, %v323_v9 }
  0x19   : > { %v328_v14 = vmul.f32 1.442695, %v327_v10 }
  0x1a   : > { %555 = vpow2.f32 %v316_v11 }
  0x1b   : > { %557 = vpow2.f32 %v320_v12 }
  0x1c   : > { %559 = vpow2.f32 %v324_v13 }
  0x1d   : > { %561 = vpow2.f32 %v328_v14 }
  0x20   : > { %v556_v16 = vpop.eup %555 }
  0x21   : > { %v558_v18 = vpop.eup %557 }
  0x22   : > { %v560_v20 = vpop.eup %559  ;;  %v322_v21 = vadd.f32 %v558_v18, %v556_v16 }
  0x23   : > { %v562_v22 = vpop.eup %561 }
  0x24   : > { %v326_v25 = vadd.f32 %v560_v20, %v322_v21 }
  0x26   : > { %v330_v26 = vadd.f32 %v562_v22, %v326_v25 }
  0x28   : > { %563 = vlog2.f32 %v330_v26 }
  0x2e   : > { %v564_v33 = vpop.eup %563 }
  0x2f   : > { %v333_v34 = vmul.f32 0.6931472, %v564_v33 }
  0x31   : > { %v334_v35 = vadd.f32 %v333_v34, %v331_v32 }
  0x33   : > { %v340_v36 = vsel %vm339_vm4, %v334_v35, -1.0 }
  0x34   : > { %343 = vst [vmem:[%s273_s29] sm:$0xff] %v340_v36  ;;  %vm341_vm5 = vcmp.gt.f32.partialorder %v340_v36, 0.7 }
  0x35   : > { %vm342_vm6 = vmand %vm339_vm4, %vm341_vm5 }
  0x36   : > { %v344_v38 = vsel %vm342_vm6, 1, %v589_v37  ;;  %v345_v39 = vsel %vm342_vm6, %v340_v36, 0.0 }
  0x37   : > { %347 = vst [vmem:[%s278_s6] sm:$0xff] %v344_v38 }
  0x38   : > { %348 = vst [vmem:[%s284_s9] sm:$0xff] %v345_v39 }
  0x39 PF: > { %s15_s17 = sadd.s32 1, %s587_s17   ;;  %s668_s15 = smov %s583_s16 }
  0x3a   : > { %p12_p5 = scmp.ge.s32.totalorder %s15_s17, 4   ;;  %s669_s16 = smov %s671_s18 }
  0x3c   :  { %14 = sbr.rel (!%p12_p5) target bundleno = 2 (0x2), region = 88 }

</bundles_post_ra>
